<compile_context>
chip_gen: v6e
topology: v6e:2x2x1
jax: 0.10.0
libtpu: 0.0.40
codegen_flags: <defaults>
</compile_context>

<pallas_src>
import functools

import jax
import jax.numpy as jnp
import numpy as np
from jax import lax
from jax.experimental import pallas as pl
from jax.experimental.pallas import tpu as pltpu

# Stage-1 matmuls are tiny; keep them ~f32-exact (multi-pass bf16 emulation).
_HIGHEST = lax.Precision.HIGHEST


# -----------------------------------------------------------------------------
# Hardware probe (only used to size tiles / vmem limits; safe fallback off-TPU)
# -----------------------------------------------------------------------------
def _vmem_capacity_bytes():
    try:
        cap = getattr(pltpu.get_tpu_info(), "vmem_capacity_bytes", None)
        if cap:
            return int(cap)
    except Exception:  # capability probe only -- never masks kernel errors
        pass
    return 128 << 20


# -----------------------------------------------------------------------------
# Stage 1: attention vectors   (fcn -> conv_t / conv_v -> sigmoid)
# -----------------------------------------------------------------------------
def _att_vec_kernel(xtv_ref, w1_ref, b1_ref, wt_ref, bt_ref, wv_ref, bv_ref,
                    t_out_ref, v_out_ref, *, T):
    # Static unroll over the batch chunk (nb <= 8); amortizes per-grid-step
    # overhead while keeping outputs directly in (N, C, *) layout (no wrapper
    # transposes needed downstream).
    nb = t_out_ref.shape[0]
    for b in range(nb):
        xtv = xtv_ref[b].astype(jnp.float32)                       # (C, T+V)
        # fcn: BN folded into w1/b1 (wrapper); one fused matmul over T+V cols.
        y = jnp.dot(w1_ref[...], xtv, precision=_HIGHEST,
                    preferred_element_type=jnp.float32) + b1_ref[...]
        y = y * jnp.clip(y + 3.0, 0.0, 6.0) * (1.0 / 6.0)          # Hardswish
        t_out_ref[b] = jax.nn.sigmoid(
            jnp.dot(wt_ref[...], y[:, :T], precision=_HIGHEST,
                    preferred_element_type=jnp.float32) + bt_ref[...])
        v_out_ref[b] = jax.nn.sigmoid(
            jnp.dot(wv_ref[...], y[:, T:], precision=_HIGHEST,
                    preferred_element_type=jnp.float32) + bv_ref[...])


def _att_vectors(x_tv, w1f, b1f, wt, bt, wv, bv, *, T, V, nb, vmem_limit):
    N, C, TV = x_tv.shape

    def wspec(a):
        return pl.BlockSpec(a.shape, lambda i, _nd=a.ndim: (0,) * _nd)

    return pl.pallas_call(
        functools.partial(_att_vec_kernel, T=T),
        out_shape=(jax.ShapeDtypeStruct((N, C, T), jnp.float32),
                   jax.ShapeDtypeStruct((N, C, V), jnp.float32)),
        grid=(N // nb,),
        in_specs=[pl.BlockSpec((nb, C, TV), lambda i: (i, 0, 0)),
                  wspec(w1f), wspec(b1f),
                  wspec(wt), wspec(bt),
                  wspec(wv), wspec(bv)],
        out_specs=(pl.BlockSpec((nb, C, T), lambda i: (i, 0, 0)),
                   pl.BlockSpec((nb, C, V), lambda i: (i, 0, 0))),
        compiler_params=pltpu.CompilerParams(
            dimension_semantics=("parallel",),
            vmem_limit_bytes=vmem_limit),
    )(x_tv, w1f, b1f, wt, bt, wv, bv)


# -----------------------------------------------------------------------------
# Stage 2: lane-dense outer-product expansion   out[c, t*V+v] = t[c,t]*v[c,v]
# -----------------------------------------------------------------------------
def _select_dot(a_f32, sel_bf16):
    """a @ sel for a 0/1 selection matrix (bf16, exact).

    Manual hi/lo bf16 split of the f32 operand: two single-pass MXU matmuls
    with f32 accumulation, ~2^-18 relative error (every output column selects
    exactly one input element).  Replaces precision=HIGHEST on both operands
    (~6+ MXU passes) per the perf review, without dropping to lossy single-pass
    DEFAULT on the t/v operand.
    """
    a_hi = a_f32.astype(jnp.bfloat16)
    a_lo = (a_f32 - a_hi.astype(jnp.float32)).astype(jnp.bfloat16)
    out = jnp.dot(a_hi, sel_bf16, preferred_element_type=jnp.float32)
    return out + jnp.dot(a_lo, sel_bf16, preferred_element_type=jnp.float32)


def _expand_kernel(t_ref, v_ref, s_ref, r_ref, o_ref, vtil_ref):
    # v_til depends only on (n, c-tile); the T-tile axis (last grid axis,
    # "arbitrary" => sequential per core) re-uses the VMEM scratch.
    @pl.when(pl.program_id(2) == 0)
    def _():
        # v_til[c, k] = v_att[c, k % V]   via  v_att @ R  (R[v,k] = [k%V == v])
        vtil_ref[...] = _select_dot(v_ref[0], r_ref[...])

    # t_rep[c, k] = t_att[c, k // V]      via  t_att @ S  (S[t,k] = [k//V == t])
    # The MXU performs the repeat/tile relayout "for free"; both compute and
    # store stay fully lane-dense (no masked vst).
    t_rep = _select_dot(t_ref[0], s_ref[...])
    o_ref[0] = (t_rep * vtil_ref[...]).astype(o_ref.dtype)


def _largest_c_tile(C, max_ct):
    """Full C, or the largest multiple-of-8 divisor of C that is <= max_ct
    (block second-minor dim must be a multiple of 8 or the full dim)."""
    if C <= max_ct:
        return C
    best = 0
    for c in range(8, max_ct + 1, 8):
        if C % c == 0:
            best = c
    return best if best else C


def _pick_tiles(C, T, V, budget_bytes):
    """(ct, tt) for the stage-2 output block (1, ct, tt*V).

    Constraints: the t-att input block (1, ct, tt) needs tt % 128 == 0 or
    tt == T (lane dim) and ct % 8 == 0 or ct == C (sublane dim).  Preference:
    keep tt minimal (tt is the MXU K-dim, i.e. matmul work per output byte)
    and grow ct toward a multi-MiB store block; only grow tt when C alone
    cannot fill the block.
    """
    tt = 128 if T % 128 == 0 else T
    blk = lambda c, t: c * t * V * 4
    max_ct = max(8, budget_bytes // (tt * V * 4))
    ct = _largest_c_tile(C, max_ct)
    # Amortize the ~0.35us/grid-step overhead; conservative cap so the kernel
    # stays store-bound (not MXU-bound) even on v5e's weaker MXU.
    while (tt < T and T % (tt * 2) == 0 and blk(ct, tt) < (4 << 20)
           and blk(ct, tt * 2) <= budget_bytes):
        tt *= 2
    return ct, tt


def _selection_matrices(tt, V):
    k = np.arange(tt * V)
    S = (k[None, :] // V == np.arange(tt)[:, None])   # (tt, tt*V)
    R = (k[None, :] % V == np.arange(V)[:, None])     # (V,  tt*V)
    # bf16 is exact for 0/1 and halves S/R HBM + VMEM traffic (review item).
    return jnp.asarray(S, jnp.bfloat16), jnp.asarray(R, jnp.bfloat16)


def _expand(t_att, v_att, *, T, V, out_dtype, block_budget, vmem_limit):
    N, C, _ = t_att.shape
    ct, tt = _pick_tiles(C, T, V, block_budget)
    L = tt * V
    S, R = _selection_matrices(tt, V)
    grid = (N, C // ct, T // tt)

    return pl.pallas_call(
        _expand_kernel,
        out_shape=jax.ShapeDtypeStruct((N, C, T * V), out_dtype),
        grid=grid,
        in_specs=[pl.BlockSpec((1, ct, tt), lambda n, ci, ti: (n, ci, ti)),
                  pl.BlockSpec((1, ct, V), lambda n, ci, ti: (n, ci, 0)),
                  pl.BlockSpec((tt, L), lambda n, ci, ti: (0, 0)),
                  pl.BlockSpec((V, L), lambda n, ci, ti: (0, 0))],
        out_specs=pl.BlockSpec((1, ct, L), lambda n, ci, ti: (n, ci, ti)),
        scratch_shapes=[pltpu.VMEM((ct, L), jnp.float32)],   # hoisted v_til
        compiler_params=pltpu.CompilerParams(
            # T-tile axis must stay sequential per core (scratch reuse).
            dimension_semantics=("parallel", "parallel", "arbitrary"),
            vmem_limit_bytes=vmem_limit),
    )(t_att, v_att, S, R)


# -----------------------------------------------------------------------------
# Wrapper, reference, params
# -----------------------------------------------------------------------------
def st_landmark_att(x, params, *, flat_output=False):
    """Forward pass of ST_Landmark_Att.  x: (N, C, T, V) -> (N, C, T, V)."""
    N, C, T, V = x.shape
    f32 = jnp.float32

    # Fold eval-mode BatchNorm (and conv bias) into the fcn 1x1 conv weights.
    w1f = (params["bn_scale"] * params["w1"]).astype(f32)                       # (Ci, C)
    b1f = (params["bn_scale"] * params["b1"] + params["bn_shift"]).astype(f32)  # (Ci, 1)

    # Stage 0 (XLA): the single read of x -> tiny pooled slab (N, C, T+V).
    xf = x.astype(f32)
    x_tv = jnp.concatenate([jnp.mean(xf, axis=3), jnp.mean(xf, axis=2)], axis=2)

    # Chip-aware budgets: ~5 MiB blocks / 48 MiB limit on v7x (64 MiB VMEM),
    # ~10 MiB blocks / 96 MiB limit on v5e/v6e (128 MiB VMEM).
    vmem_cap = _vmem_capacity_bytes()
    vmem_limit = min(vmem_cap * 3 // 4, 100 << 20)
    block_budget = max(2 << 20, vmem_limit // 9)

    # Stage 1 (Pallas): attention vectors, batch chunked to amortize step cost.
    nb = next(d for d in (8, 7, 6, 5, 4, 3, 2, 1) if N % d == 0)
    t_att, v_att = _att_vectors(
        x_tv, w1f, b1f,
        params["wt"].astype(f32), params["bt"].astype(f32),
        params["wv"].astype(f32), params["bv"].astype(f32),
        T=T, V=V, nb=nb, vmem_limit=min(vmem_limit, 48 << 20))

    # Stage 2 (Pallas): lane-dense outer-product expansion, written flat.
    out_flat = _expand(t_att, v_att, T=T, V=V, out_dtype=x.dtype,
                       block_budget=block_budget, vmem_limit=vmem_limit)
    if flat_output:
        # Lane-dense (N, C, T*V) layout -- prefer this when the consumer can be
        # fused (e.g. it multiplies x by the attention map), since materializing
        # the 4-D result below forces XLA's padded V-minor (8,128) layout.
        return out_flat
    return out_flat.reshape(N, C, T, V)


def _reference(x, p):
    """Pure-JAX mirror of the PyTorch forward (eval-mode BN, un-folded)."""
    xf = x.astype(jnp.float32)
    x_t = jnp.mean(xf, axis=3)                                        # (N, C, T)
    x_v = jnp.mean(xf, axis=2)                                        # (N, C, V)

    def fcn(z):
        y = jnp.einsum("ic,ncs->nis", p["w1"], z, precision=_HIGHEST) + p["b1"][None]
        y = y * p["bn_scale"][None] + p["bn_shift"][None]
        return y * jnp.clip(y + 3.0, 0.0, 6.0) / 6.0

    y_t, y_v = fcn(x_t), fcn(x_v)
    t_att = jax.nn.sigmoid(
        jnp.einsum("ci,nis->ncs", p["wt"], y_t, precision=_HIGHEST) + p["bt"][None])
    v_att = jax.nn.sigmoid(
        jnp.einsum("ci,nis->ncs", p["wv"], y_v, precision=_HIGHEST) + p["bv"][None])
    return (t_att[:, :, :, None] * v_att[:, :, None, :]).astype(x.dtype)


def init_params(key, channel, reduct_ratio, bias=True):
    ci = channel // reduct_ratio
    ks = jax.random.split(key, 10)
    scale = 0.2
    w1 = scale * jax.random.normal(ks[0], (ci, channel), jnp.float32)     # fcn 1x1 conv
    b1 = (scale * jax.random.normal(ks[1], (ci,), jnp.float32) if bias
          else jnp.zeros((ci,), jnp.float32)).reshape(ci, 1)
    # BatchNorm2d(inner_channel) in eval mode: running stats + affine.
    gamma = 1.0 + 0.1 * jax.random.normal(ks[2], (ci,), jnp.float32)
    beta = 0.1 * jax.random.normal(ks[3], (ci,), jnp.float32)
    run_mean = 0.1 * jax.random.normal(ks[4], (ci,), jnp.float32)
    run_var = jnp.abs(1.0 + 0.1 * jax.random.normal(ks[5], (ci,), jnp.float32))
    eps = 1e-5
    inv_std = gamma / jnp.sqrt(run_var + eps)
    bn_scale = inv_std.reshape(ci, 1)
    bn_shift = (beta - run_mean * inv_std).reshape(ci, 1)
    wt = scale * jax.random.normal(ks[6], (channel, ci), jnp.float32)     # conv_t (1x1)
    bt = scale * jax.random.normal(ks[7], (channel,), jnp.float32).reshape(channel, 1)
    wv = scale * jax.random.normal(ks[8], (channel, ci), jnp.float32)     # conv_v (1x1)
    bv = scale * jax.random.normal(ks[9], (channel,), jnp.float32).reshape(channel, 1)
    return dict(w1=w1, b1=b1, bn_scale=bn_scale, bn_shift=bn_shift,
                wt=wt, bt=bt, wv=wv, bv=bv)


if __name__ == "__main__":
    key = jax.random.PRNGKey(0)
    k_x, k_p = jax.random.split(key)

    N, C, T, V = 2, 16, 16, 8          # reduct_ratio=4, bias=True -> inner=4
    x = jax.random.normal(k_x, (N, C, T, V), jnp.float32)
    params = init_params(k_p, channel=C, reduct_ratio=4, bias=True)

    fwd = jax.jit(st_landmark_att)
    out = jax.block_until_ready(fwd(x, params))
    ref = jax.block_until_ready(_reference(x, params))

    assert out.shape == (N, C, T, V)
    # Tolerance covers the hi/lo bf16 split (~1e-5 rel), stage-1 MXU f32
    # emulation, and folded-vs-unfolded BN rounding; structural bugs would
    # show up as errors >= ~1e-2.
    max_err = float(jnp.max(jnp.abs(out - ref)))
    assert jnp.allclose(out, ref, atol=1e-3, rtol=1e-3), max_err
    print("KERNEL_OK")
</pallas_src>

<mosaic_0001>
module attributes {stable_mosaic.version = 11 : i64} {
  func.func @_expand_kernel(%arg0: i32, %arg1: i32, %arg2: i32, %arg3: memref<1x16x16xf32, #tpu.memory_space<vmem>>, %arg4: memref<1x16x8xf32, #tpu.memory_space<vmem>>, %arg5: memref<16x128xbf16, #tpu.memory_space<vmem>>, %arg6: memref<8x128xbf16, #tpu.memory_space<vmem>>, %arg7: memref<1x16x128xf32, #tpu.memory_space<vmem>>, %arg8: memref<16x128xf32, #tpu.memory_space<vmem>>) attributes {dimension_semantics = [#tpu.dimension_semantics<parallel>, #tpu.dimension_semantics<parallel>, #tpu.dimension_semantics<arbitrary>], iteration_bounds = array<i64: 2, 1, 1>, scalar_prefetch = 0 : i64, scratch_operands = 1 : i64, tpu.core_type = #tpu.core_type<tc>, window_params = [{transform_indices = @transform_0, window_bounds = array<i64: 1, 16, 16>}, {transform_indices = @transform_1, window_bounds = array<i64: 1, 16, 8>}, {pipeline_mode = #tpu.pipeline_mode<synchronous>, transform_indices = @transform_2, window_bounds = array<i64: 16, 128>}, {pipeline_mode = #tpu.pipeline_mode<synchronous>, transform_indices = @transform_3, window_bounds = array<i64: 8, 128>}, {transform_indices = @transform_4, window_bounds = array<i64: 1, 16, 128>}]} {
    %c0_i32 = arith.constant 0 : i32
    %0 = arith.cmpi eq, %arg2, %c0_i32 : i32
    %1 = arith.extui %0 : i1 to i32
    %c0_i32_0 = arith.constant 0 : i32
    %2 = arith.cmpi ne, %1, %c0_i32_0 : i32
    scf.if %2 {
      %c0_11 = arith.constant 0 : index
      %c0_12 = arith.constant 0 : index
      %c0_13 = arith.constant 0 : index
      %18 = vector.load %arg4[%c0_11, %c0_12, %c0_13] : memref<1x16x8xf32, #tpu.memory_space<vmem>>, vector<1x16x8xf32>
      %19 = vector.shape_cast %18 : vector<1x16x8xf32> to vector<16x8xf32>
      %c0_14 = arith.constant 0 : index
      %c0_15 = arith.constant 0 : index
      %20 = vector.load %arg6[%c0_14, %c0_15] : memref<8x128xbf16, #tpu.memory_space<vmem>>, vector<8x128xbf16>
      %21 = arith.truncf %19 : vector<16x8xf32> to vector<16x8xbf16>
      %22 = arith.extf %21 : vector<16x8xbf16> to vector<16x8xf32>
      %23 = arith.subf %19, %22 : vector<16x8xf32>
      %24 = arith.truncf %23 : vector<16x8xf32> to vector<16x8xbf16>
      %cst_16 = arith.constant dense<0.000000e+00> : vector<16x128xf32>
      %25 = tpu.matmul %21, %20, %cst_16 {dimension_numbers = #tpu.dot_dimension_numbers<[1], [0], [0], [1], [0, 0, 1, 1], [], []>} : vector<16x8xbf16>, vector<8x128xbf16>, vector<16x128xf32> -> vector<16x128xf32>
      %cst_17 = arith.constant dense<0.000000e+00> : vector<16x128xf32>
      %26 = tpu.matmul %24, %20, %cst_17 {dimension_numbers = #tpu.dot_dimension_numbers<[1], [0], [0], [1], [0, 0, 1, 1], [], []>} : vector<16x8xbf16>, vector<8x128xbf16>, vector<16x128xf32> -> vector<16x128xf32>
      %27 = arith.addf %25, %26 : vector<16x128xf32>
      %c0_18 = arith.constant 0 : index
      %c0_19 = arith.constant 0 : index
      %28 = vector.load %arg8[%c0_18, %c0_19] : memref<16x128xf32, #tpu.memory_space<vmem>>, vector<16x128xf32>
      tpu.vector_store %arg8[%c0_18, %c0_19], %27 {strides = array<i32>} : memref<16x128xf32, #tpu.memory_space<vmem>>, vector<16x128xf32>,
    } else {
    }
    %c0 = arith.constant 0 : index
    %c0_1 = arith.constant 0 : index
    %c0_2 = arith.constant 0 : index
    %3 = vector.load %arg3[%c0, %c0_1, %c0_2] : memref<1x16x16xf32, #tpu.memory_space<vmem>>, vector<1x16x16xf32>
    %4 = vector.shape_cast %3 : vector<1x16x16xf32> to vector<16x16xf32>
    %c0_3 = arith.constant 0 : index
    %c0_4 = arith.constant 0 : index
    %5 = vector.load %arg5[%c0_3, %c0_4] : memref<16x128xbf16, #tpu.memory_space<vmem>>, vector<16x128xbf16>
    %6 = arith.truncf %4 : vector<16x16xf32> to vector<16x16xbf16>
    %7 = arith.extf %6 : vector<16x16xbf16> to vector<16x16xf32>
    %8 = arith.subf %4, %7 : vector<16x16xf32>
    %9 = arith.truncf %8 : vector<16x16xf32> to vector<16x16xbf16>
    %cst = arith.constant dense<0.000000e+00> : vector<16x128xf32>
    %10 = tpu.matmul %6, %5, %cst {dimension_numbers = #tpu.dot_dimension_numbers<[1], [0], [0], [1], [0, 0, 1, 1], [], []>} : vector<16x16xbf16>, vector<16x128xbf16>, vector<16x128xf32> -> vector<16x128xf32>
    %cst_5 = arith.constant dense<0.000000e+00> : vector<16x128xf32>
    %11 = tpu.matmul %9, %5, %cst_5 {dimension_numbers = #tpu.dot_dimension_numbers<[1], [0], [0], [1], [0, 0, 1, 1], [], []>} : vector<16x16xbf16>, vector<16x128xbf16>, vector<16x128xf32> -> vector<16x128xf32>
    %12 = arith.addf %10, %11 : vector<16x128xf32>
    %c0_6 = arith.constant 0 : index
    %c0_7 = arith.constant 0 : index
    %13 = vector.load %arg8[%c0_6, %c0_7] : memref<16x128xf32, #tpu.memory_space<vmem>>, vector<16x128xf32>
    %14 = arith.mulf %12, %13 : vector<16x128xf32>
    %c0_8 = arith.constant 0 : index
    %c0_9 = arith.constant 0 : index
    %c0_10 = arith.constant 0 : index
    %15 = vector.load %arg7[%c0_8, %c0_9, %c0_10] : memref<1x16x128xf32, #tpu.memory_space<vmem>>, vector<1x16x128xf32>
    %16 = vector.shape_cast %15 : vector<1x16x128xf32> to vector<16x128xf32>
    %17 = vector.shape_cast %14 : vector<16x128xf32> to vector<1x16x128xf32>
    tpu.vector_store %arg7[%c0_8, %c0_9, %c0_10], %17 {strides = array<i32>} : memref<1x16x128xf32, #tpu.memory_space<vmem>>, vector<1x16x128xf32>,
    return
  }
  func.func @transform_0(%arg0: i32, %arg1: i32, %arg2: i32) -> (i32, i32, i32) {
    %c0_i32 = arith.constant 0 : i32
    return %arg0, %arg1, %arg2 : i32, i32, i32
  }
  func.func @transform_1(%arg0: i32, %arg1: i32, %arg2: i32) -> (i32, i32, i32) {
    %c0_i32 = arith.constant 0 : i32
    %c0_i32_0 = arith.constant 0 : i32
    return %arg0, %arg1, %c0_i32 : i32, i32, i32
  }
  func.func @transform_2(%arg0: i32, %arg1: i32, %arg2: i32) -> (i32, i32) {
    %c0_i32 = arith.constant 0 : i32
    %c0_i32_0 = arith.constant 0 : i32
    %c0_i32_1 = arith.constant 0 : i32
    return %c0_i32, %c0_i32_0 : i32, i32
  }
  func.func @transform_3(%arg0: i32, %arg1: i32, %arg2: i32) -> (i32, i32) {
    %c0_i32 = arith.constant 0 : i32
    %c0_i32_0 = arith.constant 0 : i32
    %c0_i32_1 = arith.constant 0 : i32
    return %c0_i32, %c0_i32_0 : i32, i32
  }
  func.func @transform_4(%arg0: i32, %arg1: i32, %arg2: i32) -> (i32, i32, i32) {
    %c0_i32 = arith.constant 0 : i32
    return %arg0, %arg1, %arg2 : i32, i32, i32
  }
}

module attributes {stable_mosaic.version = 11 : i64} {
  func.func @_att_vec_kernel(%arg0: i32, %arg1: memref<2x16x24xf32, #tpu.memory_space<vmem>>, %arg2: memref<4x16xf32, #tpu.memory_space<vmem>>, %arg3: memref<4x1xf32, #tpu.memory_space<vmem>>, %arg4: memref<16x4xf32, #tpu.memory_space<vmem>>, %arg5: memref<16x1xf32, #tpu.memory_space<vmem>>, %arg6: memref<16x4xf32, #tpu.memory_space<vmem>>, %arg7: memref<16x1xf32, #tpu.memory_space<vmem>>, %arg8: memref<2x16x16xf32, #tpu.memory_space<vmem>>, %arg9: memref<2x16x8xf32, #tpu.memory_space<vmem>>) attributes {dimension_semantics = [#tpu.dimension_semantics<parallel>], iteration_bounds = array<i64: 1>, scalar_prefetch = 0 : i64, scratch_operands = 0 : i64, tpu.core_type = #tpu.core_type<tc>, window_params = [{transform_indices = @transform_0, window_bounds = array<i64: 2, 16, 24>}, {pipeline_mode = #tpu.pipeline_mode<synchronous>, transform_indices = @transform_1, window_bounds = array<i64: 4, 16>}, {pipeline_mode = #tpu.pipeline_mode<synchronous>, transform_indices = @transform_2, window_bounds = array<i64: 4, 1>}, {pipeline_mode = #tpu.pipeline_mode<synchronous>, transform_indices = @transform_3, window_bounds = array<i64: 16, 4>}, {pipeline_mode = #tpu.pipeline_mode<synchronous>, transform_indices = @transform_4, window_bounds = array<i64: 16, 1>}, {pipeline_mode = #tpu.pipeline_mode<synchronous>, transform_indices = @transform_5, window_bounds = array<i64: 16, 4>}, {pipeline_mode = #tpu.pipeline_mode<synchronous>, transform_indices = @transform_6, window_bounds = array<i64: 16, 1>}, {transform_indices = @transform_7, window_bounds = array<i64: 2, 16, 16>}, {transform_indices = @transform_8, window_bounds = array<i64: 2, 16, 8>}]} {
    %c0 = arith.constant 0 : index
    %c0_0 = arith.constant 0 : index
    %c0_1 = arith.constant 0 : index
    %0 = vector.load %arg1[%c0, %c0_0, %c0_1] : memref<2x16x24xf32, #tpu.memory_space<vmem>>, vector<1x16x24xf32>
    %1 = vector.shape_cast %0 : vector<1x16x24xf32> to vector<16x24xf32>
    %c0_2 = arith.constant 0 : index
    %c0_3 = arith.constant 0 : index
    %2 = vector.load %arg2[%c0_2, %c0_3] : memref<4x16xf32, #tpu.memory_space<vmem>>, vector<4x16xf32>
    %cst = arith.constant dense<0.000000e+00> : vector<4x24xf32>
    %3 = tpu.matmul %2, %1, %cst {dimension_numbers = #tpu.dot_dimension_numbers<[1], [0], [0], [1], [0, 0, 1, 1], [], []>, precision = #tpu.contract_precision<fp32>} : vector<4x16xf32>, vector<16x24xf32>, vector<4x24xf32> -> vector<4x24xf32>
    %c0_4 = arith.constant 0 : index
    %c0_5 = arith.constant 0 : index
    %4 = vector.load %arg3[%c0_4, %c0_5] : memref<4x1xf32, #tpu.memory_space<vmem>>, vector<4x1xf32>
    %5 = vector.broadcast %4 : vector<4x1xf32> to vector<4x24xf32>
    %6 = arith.addf %3, %5 : vector<4x24xf32>
    %cst_6 = arith.constant 3.000000e+00 : f32
    %7 = vector.broadcast %cst_6 : f32 to vector<4x24xf32>
    %8 = arith.addf %6, %7 : vector<4x24xf32>
    %cst_7 = arith.constant 0.000000e+00 : f32
    %cst_8 = arith.constant 6.000000e+00 : f32
    %9 = vector.broadcast %cst_7 : f32 to vector<4x24xf32>
    %10 = arith.maximumf %9, %8 : vector<4x24xf32>
    %11 = vector.broadcast %cst_8 : f32 to vector<4x24xf32>
    %12 = arith.minimumf %11, %10 : vector<4x24xf32>
    %13 = arith.mulf %6, %12 : vector<4x24xf32>
    %cst_9 = arith.constant 0.166666672 : f32
    %14 = vector.broadcast %cst_9 : f32 to vector<4x24xf32>
    %15 = arith.mulf %13, %14 : vector<4x24xf32>
    %c0_10 = arith.constant 0 : index
    %c0_11 = arith.constant 0 : index
    %16 = vector.load %arg4[%c0_10, %c0_11] : memref<16x4xf32, #tpu.memory_space<vmem>>, vector<16x4xf32>
    %17 = vector.extract_strided_slice %15 {offsets = [0, 0], sizes = [4, 16], strides = [1, 1]} : vector<4x24xf32> to vector<4x16xf32>
    %cst_12 = arith.constant dense<0.000000e+00> : vector<16x16xf32>
    %18 = tpu.matmul %16, %17, %cst_12 {dimension_numbers = #tpu.dot_dimension_numbers<[1], [0], [0], [1], [0, 0, 1, 1], [], []>, precision = #tpu.contract_precision<fp32>} : vector<16x4xf32>, vector<4x16xf32>, vector<16x16xf32> -> vector<16x16xf32>
    %c0_13 = arith.constant 0 : index
    %c0_14 = arith.constant 0 : index
    %19 = vector.load %arg5[%c0_13, %c0_14] : memref<16x1xf32, #tpu.memory_space<vmem>>, vector<16x1xf32>
    %20 = vector.broadcast %19 : vector<16x1xf32> to vector<16x16xf32>
    %21 = arith.addf %18, %20 : vector<16x16xf32>
    %22 = arith.negf %21 : vector<16x16xf32>
    %23 = math.exp %22 : vector<16x16xf32>
    %cst_15 = arith.constant 1.000000e+00 : f32
    %24 = vector.broadcast %cst_15 : f32 to vector<16x16xf32>
    %25 = arith.addf %24, %23 : vector<16x16xf32>
    %26 = arith.divf %24, %25 : vector<16x16xf32>
    %c0_16 = arith.constant 0 : index
    %c0_17 = arith.constant 0 : index
    %c0_18 = arith.constant 0 : index
    %27 = vector.load %arg8[%c0_16, %c0_17, %c0_18] : memref<2x16x16xf32, #tpu.memory_space<vmem>>, vector<1x16x16xf32>
    %28 = vector.shape_cast %27 : vector<1x16x16xf32> to vector<16x16xf32>
    %29 = vector.shape_cast %26 : vector<16x16xf32> to vector<1x16x16xf32>
    tpu.vector_store %arg8[%c0_16, %c0_17, %c0_18], %29 {strides = array<i32>} : memref<2x16x16xf32, #tpu.memory_space<vmem>>, vector<1x16x16xf32>,
    %c0_19 = arith.constant 0 : index
    %c0_20 = arith.constant 0 : index
    %30 = vector.load %arg6[%c0_19, %c0_20] : memref<16x4xf32, #tpu.memory_space<vmem>>, vector<16x4xf32>
    %31 = vector.extract_strided_slice %15 {offsets = [0, 16], sizes = [4, 8], strides = [1, 1]} : vector<4x24xf32> to vector<4x8xf32>
    %cst_21 = arith.constant dense<0.000000e+00> : vector<16x8xf32>
    %32 = tpu.matmul %30, %31, %cst_21 {dimension_numbers = #tpu.dot_dimension_numbers<[1], [0], [0], [1], [0, 0, 1, 1], [], []>, precision = #tpu.contract_precision<fp32>} : vector<16x4xf32>, vector<4x8xf32>, vector<16x8xf32> -> vector<16x8xf32>
    %c0_22 = arith.constant 0 : index
    %c0_23 = arith.constant 0 : index
    %33 = vector.load %arg7[%c0_22, %c0_23] : memref<16x1xf32, #tpu.memory_space<vmem>>, vector<16x1xf32>
    %34 = vector.broadcast %33 : vector<16x1xf32> to vector<16x8xf32>
    %35 = arith.addf %32, %34 : vector<16x8xf32>
    %36 = arith.negf %35 : vector<16x8xf32>
    %37 = math.exp %36 : vector<16x8xf32>
    %cst_24 = arith.constant 1.000000e+00 : f32
    %38 = vector.broadcast %cst_24 : f32 to vector<16x8xf32>
    %39 = arith.addf %38, %37 : vector<16x8xf32>
    %40 = arith.divf %38, %39 : vector<16x8xf32>
    %c0_25 = arith.constant 0 : index
    %c0_26 = arith.constant 0 : index
    %c0_27 = arith.constant 0 : index
    %41 = vector.load %arg9[%c0_25, %c0_26, %c0_27] : memref<2x16x8xf32, #tpu.memory_space<vmem>>, vector<1x16x8xf32>
    %42 = vector.shape_cast %41 : vector<1x16x8xf32> to vector<16x8xf32>
    %43 = vector.shape_cast %40 : vector<16x8xf32> to vector<1x16x8xf32>
    tpu.vector_store %arg9[%c0_25, %c0_26, %c0_27], %43 {strides = array<i32>} : memref<2x16x8xf32, #tpu.memory_space<vmem>>, vector<1x16x8xf32>,
    %c1 = arith.constant 1 : index
    %c0_28 = arith.constant 0 : index
    %c0_29 = arith.constant 0 : index
    %44 = vector.load %arg1[%c1, %c0_28, %c0_29] : memref<2x16x24xf32, #tpu.memory_space<vmem>>, vector<1x16x24xf32>
    %45 = vector.shape_cast %44 : vector<1x16x24xf32> to vector<16x24xf32>
    %c0_30 = arith.constant 0 : index
    %c0_31 = arith.constant 0 : index
    %46 = vector.load %arg2[%c0_30, %c0_31] : memref<4x16xf32, #tpu.memory_space<vmem>>, vector<4x16xf32>
    %cst_32 = arith.constant dense<0.000000e+00> : vector<4x24xf32>
    %47 = tpu.matmul %46, %45, %cst_32 {dimension_numbers = #tpu.dot_dimension_numbers<[1], [0], [0], [1], [0, 0, 1, 1], [], []>, precision = #tpu.contract_precision<fp32>} : vector<4x16xf32>, vector<16x24xf32>, vector<4x24xf32> -> vector<4x24xf32>
    %c0_33 = arith.constant 0 : index
    %c0_34 = arith.constant 0 : index
    %48 = vector.load %arg3[%c0_33, %c0_34] : memref<4x1xf32, #tpu.memory_space<vmem>>, vector<4x1xf32>
    %49 = vector.broadcast %48 : vector<4x1xf32> to vector<4x24xf32>
    %50 = arith.addf %47, %49 : vector<4x24xf32>
    %cst_35 = arith.constant 3.000000e+00 : f32
    %51 = vector.broadcast %cst_35 : f32 to vector<4x24xf32>
    %52 = arith.addf %50, %51 : vector<4x24xf32>
    %cst_36 = arith.constant 0.000000e+00 : f32
    %cst_37 = arith.constant 6.000000e+00 : f32
    %53 = vector.broadcast %cst_36 : f32 to vector<4x24xf32>
    %54 = arith.maximumf %53, %52 : vector<4x24xf32>
    %55 = vector.broadcast %cst_37 : f32 to vector<4x24xf32>
    %56 = arith.minimumf %55, %54 : vector<4x24xf32>
    %57 = arith.mulf %50, %56 : vector<4x24xf32>
    %cst_38 = arith.constant 0.166666672 : f32
    %58 = vector.broadcast %cst_38 : f32 to vector<4x24xf32>
    %59 = arith.mulf %57, %58 : vector<4x24xf32>
    %c0_39 = arith.constant 0 : index
    %c0_40 = arith.constant 0 : index
    %60 = vector.load %arg4[%c0_39, %c0_40] : memref<16x4xf32, #tpu.memory_space<vmem>>, vector<16x4xf32>
    %61 = vector.extract_strided_slice %59 {offsets = [0, 0], sizes = [4, 16], strides = [1, 1]} : vector<4x24xf32> to vector<4x16xf32>
    %cst_41 = arith.constant dense<0.000000e+00> : vector<16x16xf32>
    %62 = tpu.matmul %60, %61, %cst_41 {dimension_numbers = #tpu.dot_dimension_numbers<[1], [0], [0], [1], [0, 0, 1, 1], [], []>, precision = #tpu.contract_precision<fp32>} : vector<16x4xf32>, vector<4x16xf32>, vector<16x16xf32> -> vector<16x16xf32>
    %c0_42 = arith.constant 0 : index
    %c0_43 = arith.constant 0 : index
    %63 = vector.load %arg5[%c0_42, %c0_43] : memref<16x1xf32, #tpu.memory_space<vmem>>, vector<16x1xf32>
    %64 = vector.broadcast %63 : vector<16x1xf32> to vector<16x16xf32>
    %65 = arith.addf %62, %64 : vector<16x16xf32>
    %66 = arith.negf %65 : vector<16x16xf32>
    %67 = math.exp %66 : vector<16x16xf32>
    %cst_44 = arith.constant 1.000000e+00 : f32
    %68 = vector.broadcast %cst_44 : f32 to vector<16x16xf32>
    %69 = arith.addf %68, %67 : vector<16x16xf32>
    %70 = arith.divf %68, %69 : vector<16x16xf32>
    %c1_45 = arith.constant 1 : index
    %c0_46 = arith.constant 0 : index
    %c0_47 = arith.constant 0 : index
    %71 = vector.load %arg8[%c1_45, %c0_46, %c0_47] : memref<2x16x16xf32, #tpu.memory_space<vmem>>, vector<1x16x16xf32>
    %72 = vector.shape_cast %71 : vector<1x16x16xf32> to vector<16x16xf32>
    %73 = vector.shape_cast %70 : vector<16x16xf32> to vector<1x16x16xf32>
    tpu.vector_store %arg8[%c1_45, %c0_46, %c0_47], %73 {strides = array<i32>} : memref<2x16x16xf32, #tpu.memory_space<vmem>>, vector<1x16x16xf32>,
    %c0_48 = arith.constant 0 : index
    %c0_49 = arith.constant 0 : index
    %74 = vector.load %arg6[%c0_48, %c0_49] : memref<16x4xf32, #tpu.memory_space<vmem>>, vector<16x4xf32>
    %75 = vector.extract_strided_slice %59 {offsets = [0, 16], sizes = [4, 8], strides = [1, 1]} : vector<4x24xf32> to vector<4x8xf32>
    %cst_50 = arith.constant dense<0.000000e+00> : vector<16x8xf32>
    %76 = tpu.matmul %74, %75, %cst_50 {dimension_numbers = #tpu.dot_dimension_numbers<[1], [0], [0], [1], [0, 0, 1, 1], [], []>, precision = #tpu.contract_precision<fp32>} : vector<16x4xf32>, vector<4x8xf32>, vector<16x8xf32> -> vector<16x8xf32>
    %c0_51 = arith.constant 0 : index
    %c0_52 = arith.constant 0 : index
    %77 = vector.load %arg7[%c0_51, %c0_52] : memref<16x1xf32, #tpu.memory_space<vmem>>, vector<16x1xf32>
    %78 = vector.broadcast %77 : vector<16x1xf32> to vector<16x8xf32>
    %79 = arith.addf %76, %78 : vector<16x8xf32>
    %80 = arith.negf %79 : vector<16x8xf32>
    %81 = math.exp %80 : vector<16x8xf32>
    %cst_53 = arith.constant 1.000000e+00 : f32
    %82 = vector.broadcast %cst_53 : f32 to vector<16x8xf32>
    %83 = arith.addf %82, %81 : vector<16x8xf32>
    %84 = arith.divf %82, %83 : vector<16x8xf32>
    %c1_54 = arith.constant 1 : index
    %c0_55 = arith.constant 0 : index
    %c0_56 = arith.constant 0 : index
    %85 = vector.load %arg9[%c1_54, %c0_55, %c0_56] : memref<2x16x8xf32, #tpu.memory_space<vmem>>, vector<1x16x8xf32>
    %86 = vector.shape_cast %85 : vector<1x16x8xf32> to vector<16x8xf32>
    %87 = vector.shape_cast %84 : vector<16x8xf32> to vector<1x16x8xf32>
    tpu.vector_store %arg9[%c1_54, %c0_55, %c0_56], %87 {strides = array<i32>} : memref<2x16x8xf32, #tpu.memory_space<vmem>>, vector<1x16x8xf32>,
    return
  }
  func.func @transform_0(%arg0: i32) -> (i32, i32, i32) {
    %c0_i32 = arith.constant 0 : i32
    %c0_i32_0 = arith.constant 0 : i32
    %c0_i32_1 = arith.constant 0 : i32
    return %arg0, %c0_i32, %c0_i32_0 : i32, i32, i32
  }
  func.func @transform_1(%arg0: i32) -> (i32, i32) {
    %c0_i32 = arith.constant 0 : i32
    %c0_i32_0 = arith.constant 0 : i32
    %c0_i32_1 = arith.constant 0 : i32
    return %c0_i32, %c0_i32_0 : i32, i32
  }
  func.func @transform_2(%arg0: i32) -> (i32, i32) {
    %c0_i32 = arith.constant 0 : i32
    %c0_i32_0 = arith.constant 0 : i32
    %c0_i32_1 = arith.constant 0 : i32
    return %c0_i32, %c0_i32_0 : i32, i32
  }
  func.func @transform_3(%arg0: i32) -> (i32, i32) {
    %c0_i32 = arith.constant 0 : i32
    %c0_i32_0 = arith.constant 0 : i32
    %c0_i32_1 = arith.constant 0 : i32
    return %c0_i32, %c0_i32_0 : i32, i32
  }
  func.func @transform_4(%arg0: i32) -> (i32, i32) {
    %c0_i32 = arith.constant 0 : i32
    %c0_i32_0 = arith.constant 0 : i32
    %c0_i32_1 = arith.constant 0 : i32
    return %c0_i32, %c0_i32_0 : i32, i32
  }
  func.func @transform_5(%arg0: i32) -> (i32, i32) {
    %c0_i32 = arith.constant 0 : i32
    %c0_i32_0 = arith.constant 0 : i32
    %c0_i32_1 = arith.constant 0 : i32
    return %c0_i32, %c0_i32_0 : i32, i32
  }
  func.func @transform_6(%arg0: i32) -> (i32, i32) {
    %c0_i32 = arith.constant 0 : i32
    %c0_i32_0 = arith.constant 0 : i32
    %c0_i32_1 = arith.constant 0 : i32
    return %c0_i32, %c0_i32_0 : i32, i32
  }
  func.func @transform_7(%arg0: i32) -> (i32, i32, i32) {
    %c0_i32 = arith.constant 0 : i32
    %c0_i32_0 = arith.constant 0 : i32
    %c0_i32_1 = arith.constant 0 : i32
    return %arg0, %c0_i32, %c0_i32_0 : i32, i32, i32
  }
  func.func @transform_8(%arg0: i32) -> (i32, i32, i32) {
    %c0_i32 = arith.constant 0 : i32
    %c0_i32_0 = arith.constant 0 : i32
    %c0_i32_1 = arith.constant 0 : i32
    return %arg0, %c0_i32, %c0_i32_0 : i32, i32, i32
  }
}

</mosaic_0001>

<bundles_post_ra>
// kernel: st_landmark_att.3
= control target key start
LH: loop header
LB: loop body
LE: loop exit
PB: predicated region body
PF: predicated region fallthrough
CT: control target
= control target key end

     0   :  { %s771_s15 = smov 0   ;;  %s773_s16 = smov 0   ;;  %s824_s0 = inlined_call_operand.vmem [shape: f32[2,16,16], index: 0, kind: input, shape index: {}]   ;;  %s825_s1 = inlined_call_operand.vmem [shape: f32[2,16,8], index: 1, kind: input, shape index: {}]   ;;  %s826_s2 = inlined_call_operand.vmem [shape: bf16[16,128], index: 2, kind: input, shape index: {}]   ;;  %s827_s3 = inlined_call_operand.vmem [shape: bf16[8,128], index: 3, kind: input, shape index: {}]   ;;  %s828_s4 = inlined_call_operand.vmem [shape: f32[2,16,128], index: 4, kind: output, shape index: {}]  }
   0x1   :  { %s775_s17 = smov 0  }
   0x2 LB: > { %s33_s18 = sadd.s32 1, %s738_s16  ;;  %p644_p0 = scmp.ge.s32.totalorder %s742_s17, 1  ;;  %s742_s17 = sphi %s775_s17, %s14_s17   ;;  %s738_s16 = sphi %s773_s16, %s830_s16   ;;  %s734_s15 = sphi %s771_s15, %s829_s15  }
   0x3   : > { %p35_p1 = scmp.ge.s32.totalorder %s33_s18, 2  ;;  %p214_p2 = scmp.lt.s32.totalorder %s742_s17, 3 }
   0x5   : > { %s832_s18 = smov (%p35_p1, %s33_s18), 0  ;;  %p215_p3 = pnand %p644_p0, %p214_p2 }
   0x6   : > { %p264_p4 = scmp.lt.s32.totalorder (!%p215_p3), %s734_s15, 1 }
   0x7   : > { %218 = sbr.rel (%p215_p3) target bundleno = 234 (0xea), region = 36 }
   0xc   : > { %v306_v0 = vld [vmem:[%s827_s3] sm:$0xf]  ;;  %vm317_vm0 = vcmask 1043456   ;;  %v744_v1 = vmov 0.0   ;;  %vm745_vm1 = vmmov 0   ;;  %s834_s15 = smov (!%p264_p4, %s734_s15), 1 }
   0xd   : > { %675 = vmatprep.subr.bf16.mxu1 %v744_v1  ;;  %v319_v2 = vsel %vm317_vm0, %v306_v0, 0  ;;  %677 = vmatprep.mubr.msk.bf16.mxu1 %vm745_vm1, %v744_v1  ;;  %s793_s21 = sshll.u32 %s834_s15, 4  ;;  %v719_v3 = vld [vmem:[%s826_s2] sm:$0xff]   ;;  %vm313_vm2 = vcmask 64512   ;;  %vm424_vm3 = vcmask 130048  }
   0xe   : > { %676 = vmatpush3.bf16.msra.mxu1 %v319_v2  ;;  %669 = vmatprep.subr.bf16.mxu0 %v744_v1  ;;  %s284_s24 = scalar_lea.vmem %s825_s1, %s793_s21  ;;  %s274_s29 = scalar_lea.vmem %s824_s0, %s793_s21 }
   0xf   : > { %670 = vmatpush3.bf16.msra.mxu0 %v319_v2  ;;  %687 = vmatprep.subr.bf16.mxu1 %v744_v1  ;;  %v304_v4 = vld [vmem:[%s284_s24] sm:$0xff]  ;;  %v305_v5 = vld [vmem:[%s284_s24 + $0x8] sm:$0xff]  ;;  %s297_s6 = scalar_lea.vmem %s828_s4, %s793_s21 }
  0x10   : > { %671 = vmatprep.mubr.msk.bf16.mxu0 %vm745_vm1, %v744_v1  ;;  %681 = vmatprep.subr.bf16.mxu0 %v744_v1  ;;  %v408_v6 = vld [vmem:[%s274_s29] sm:$0xff]  ;;  %v307_v7 = vpack.c.bf16 %v305_v5, %v304_v4  ;;  %v409_v8 = vld [vmem:[%s274_s29 + $0x8] sm:$0xff] }
  0x11   : > { %v412_v9 = vpack.c.bf16 %v409_v8, %v408_v6 }
  0x12   : > { %678 = vmatmul.mubr.msk.bf16.vlgmr.msra.gmra.mxu1 %vm313_vm2, %v307_v7  ;;  %v308_v10 = vunpack.c.l.bf16 %v307_v7  ;;  %v309_v11 = vunpack.c.h.bf16 %v307_v7 }
  0x13   : > { %688 = vmatpush3.bf16.msra.mxu1 %v719_v3  ;;  %689 = vmatprep.mubr.msk.bf16.mxu1 %vm745_vm1, %v744_v1  ;;  %v413_v14 = vunpack.c.l.bf16 %v412_v9  ;;  %v414_v15 = vunpack.c.h.bf16 %v412_v9 }
  0x14   : > { %v310_v12 = vsub.f32 %v304_v4, %v308_v10  ;;  %v311_v13 = vsub.f32 %v305_v5, %v309_v11 }
  0x15   : > { %v415_v17 = vsub.f32 %v408_v6, %v413_v14  ;;  %v416_v18 = vsub.f32 %v409_v8, %v414_v15 }
  0x16   : > { %v312_v16 = vpack.c.bf16 %v311_v13, %v310_v12 }
  0x17   : > { %v417_v19 = vpack.c.bf16 %v416_v18, %v415_v17 }
  0x18   : > { %672 = vmatmul.mubr.msk.bf16.vlgmr.msra.gmra.mxu0 %vm313_vm2, %v312_v16 }
  0x19   : > { %682 = vmatpush3.bf16.msra.mxu0 %v719_v3  ;;  %683 = vmatprep.mubr.msk.bf16.mxu0 %vm745_vm1, %v744_v1 }
  0x1a   : > { %690 = vmatmul.mubr.msk.bf16.vlgmr.msra.gmra.mxu1 %vm424_vm3, %v412_v9 }
  0x20   : > { %684 = vmatmul.mubr.msk.bf16.vlgmr.msra.gmra.mxu0 %vm424_vm3, %v417_v19 }
  0xd2   : > { %v399_v20 = vpop.f32.mrf.mxu1 }
  0xd4   : > { %v679_v21 = vpop.f32.mrf.mxu1 }
  0xd6   : > { %v402_v22 = vpop.f32.mrf.mxu1 }
  0xd8   : > { %v355_v23 = vpop.f32.mrf.mxu0  ;;  %v680_v24 = vpop.f32.mrf.mxu1 }
  0xd9   : > { %v400_v33 = vadd.f32 %v399_v20, %v355_v23 }
  0xda   : > { %v673_v25 = vpop.f32.mrf.mxu0  ;;  %v506_v26 = vpop.f32.mrf.mxu1 }
  0xdc   : > { %v358_v27 = vpop.f32.mrf.mxu0  ;;  %v691_v28 = vpop.f32.mrf.mxu1 }
  0xdd   : > { %v403_v38 = vadd.f32 %v402_v22, %v358_v27 }
  0xde   : > { %v674_v29 = vpop.f32.mrf.mxu0  ;;  %v509_v30 = vpop.f32.mrf.mxu1 }
  0xe0   : > { %v462_v31 = vpop.f32.mrf.mxu0  ;;  %v692_v32 = vpop.f32.mrf.mxu1 }
  0xe1   : > { %v507_v34 = vadd.f32 %v506_v26, %v462_v31 }
  0xe2   : > { %v685_v35 = vpop.f32.mrf.mxu0 }
  0xe3   : > { %v515_v36 = vmul.f32 %v507_v34, %v400_v33 }
  0xe4   : > { %v465_v37 = vpop.f32.mrf.mxu0 }
  0xe5   : > { %517 = vst [vmem:[%s297_s6] sm:$0xff] %v515_v36  ;;  %v510_v39 = vadd.f32 %v509_v30, %v465_v37 }
  0xe6   : > { %v686_v40 = vpop.f32.mrf.mxu0 }
  0xe7   : > { %v516_v41 = vmul.f32 %v510_v39, %v403_v38 }
  0xe9   : > { %518 = vst [vmem:[%s297_s6 + $0x8] sm:$0xff] %v516_v41 }
  0xea PF: > { %s14_s17 = sadd.s32 1, %s742_s17   ;;  %s829_s15 = smov %s738_s16 }
  0xeb   : > { %p11_p5 = scmp.ge.s32.totalorder %s14_s17, 4   ;;  %s830_s16 = smov %s832_s18 }
  0xed   :  { %13 = sbr.rel (!%p11_p5) target bundleno = 2 (0x2), region = 73 }

// kernel: st_landmark_att.2
= control target key start
LH: loop header
LB: loop body
LE: loop exit
PB: predicated region body
PF: predicated region fallthrough
CT: control target
= control target key end

     0   :  { %vm37_vm0 = vcmask 130048   ;;  %v3465_v0 = vmov 0.0   ;;  %vm3466_vm1 = vmmov 0   ;;  %v3467_v8 = vmov 0   ;;  %s3468_s18 = smov 112   ;;  %s3809_s0 = inlined_call_operand.vmem [shape: f32[2,16,24], index: 0, kind: input, shape index: {}]   ;;  %s3810_s1 = inlined_call_operand.vmem [shape: f32[4,16], index: 1, kind: input, shape index: {}]   ;;  %s3811_s2 = inlined_call_operand.vmem [shape: f32[4,1], index: 2, kind: input, shape index: {}]   ;;  %s3812_s3 = inlined_call_operand.vmem [shape: f32[16,4], index: 3, kind: input, shape index: {}]   ;;  %s3813_s5 = inlined_call_operand.vmem [shape: f32[16,4], index: 5, kind: input, shape index: {}]   ;;  %s3814_s4 = inlined_call_operand.vmem [shape: f32[16,1], index: 4, kind: input, shape index: {}]   ;;  %s3815_s6 = inlined_call_operand.vmem [shape: f32[16,1], index: 6, kind: input, shape index: {}]   ;;  %s3816_s7 = inlined_call_operand.vmem [shape: f32[2,16,16], index: 7, kind: output, shape index: {0}]   ;;  %s3817_s8 = inlined_call_operand.vmem [shape: f32[2,16,8], index: 8, kind: output, shape index: {1}]  }
   0x1   :  { %3223 = vmatprep.subr.mxu0 %v3465_v0  ;;  %v29_v1 = vld [vmem:[%s3809_s0 + $0x8] sm:$0xff]  ;;  %3230 = vmatprep.subr.mxu1 %v3465_v0  ;;  %v28_v2 = vld [vmem:[%s3809_s0] sm:$0xff]  ;;  %vm519_vm2 = vcmask 31744   ;;  %vm526_vm3 = vcmask 1043456   ;;  %vm1558_vm4 = vcmask 64512  }
   0x2   :  { %v30_v3 = vld [vmem:[%s3810_s1] sm:$0xf]  ;;  %v70_v4 = vand.u32 4294901760, %v29_v1  ;;  %v73_v5 = vand.u32 4294901760, %v28_v2  ;;  %3227 = vmatprep.mubr.msk.f32.mxu0 %vm3466_vm1, %v3465_v0  ;;  %3234 = vmatprep.mubr.msk.f32.mxu1 %vm3466_vm1, %v3465_v0  ;;  %v506_v37 = vld [vmem:[%s3812_s3 + $0x8] sm:$0xff] }
   0x3   :  { %v39_v6 = vsel %vm37_vm0, %v30_v3, 0  ;;  %3431 = vset.pattern.permute.xlu0 %v3467_v8  ;;  %v31_v9 = vld [vmem:[%s3811_s2] sm:$0xf]  ;;  %3432 = vset.pattern.permute.xlu1 %v3467_v8  ;;  %v524_v41 = vsel %vm519_vm2, %v506_v37, 0 }
   0x4   :  { %v108_v7 = vand.u32 4294901760, %v39_v6  ;;  %3224 = vmatpush3.msra.mxu0 %v70_v4  ;;  %v148_v10 = vsub.f32 %v29_v1, %v70_v4  ;;  %v155_v11 = vsub.f32 %v28_v2, %v73_v5  ;;  %34 = vperm.xlu0 %3431, %v31_v9   ;;  %v505_v22 = vld [vmem:[%s3812_s3] sm:$0xff]  ;;  %v3573_v45 = vand.u32 4294901760, %v524_v41 }
   0x5   :  { %3225 = vmatprep.subr.mxu0 %v3465_v0  ;;  %v521_v23 = vsel %vm519_vm2, %v505_v22, 0  ;;  %v1033_v53 = vld [vmem:[%s3813_s5] sm:$0xff]  ;;  %v3106_v22 = vld [vmem:[%s3809_s0 + $0x18] sm:$0xff] }
   0x6   :  { %v109_v12 = vsub.f32 %v39_v6, %v108_v7  ;;  %3226 = vmatpush3.msra.mxu0 %v73_v5  ;;  %v149_v13 = vand.u32 4294901760, %v148_v10  ;;  %v156_v14 = vand.u32 4294901760, %v155_v11  ;;  %v3555_v24 = vand.u32 4294901760, %v521_v23  ;;  %v507_v2 = vld [vmem:[%s3814_s4] sm:$0xff] }
   0x7   :  { %3237 = vmatprep.subr.mxu0 %v3465_v0  ;;  %v3576_v51 = vsub.f32 %v524_v41, %v3573_v45  ;;  %v1050_v56 = vsel %vm519_vm2, %v1033_v53, 0 }
   0x8   :  { %v110_v15 = vand.u32 4294901760, %v109_v12  ;;  %v150_v16 = vsub.f32 %v148_v10, %v149_v13  ;;  %v157_v17 = vsub.f32 %v155_v11, %v156_v14  ;;  %v3558_v25 = vsub.f32 %v521_v23, %v3555_v24 }
   0x9   :  { %v3582_v55 = vand.u32 4294901760, %v3576_v51  ;;  %v3585_v59 = vand.u32 4294901760, %v1050_v56 }
   0xa   :  { %v111_v18 = vsub.f32 %v109_v12, %v110_v15  ;;  %v151_v19 = vand.u32 4294901760, %v150_v16  ;;  %v158_v20 = vand.u32 4294901760, %v157_v17  ;;  %v3562_v26 = vand.u32 4294901760, %v3558_v25 }
   0xb   :  { %v609_v60 = vsub.f32 %v3576_v51, %v3582_v55  ;;  %v3592_v63 = vsub.f32 %v1050_v56, %v3585_v59 }
   0xc   :  { %v112_v21 = vand.u32 4294901760, %v111_v18  ;;  %3231 = vmatpush3.msra.mxu1 %v151_v19  ;;  %v599_v27 = vsub.f32 %v3558_v25, %v3562_v26  ;;  %v1564_v18 = vld [vmem:[%s3810_s1] sm:$0xf] }
   0xd   :  { %3232 = vmatprep.subr.mxu1 %v3465_v0  ;;  %v3597_v3 = vand.u32 4294901760, %v609_v60 }
   0xe   :  { %3228 = vmatmul.mubr.f32.vlgmr.msra.gmra.mxu0 %v112_v21  ;;  %3233 = vmatpush3.msra.mxu1 %v158_v20  ;;  %v3566_v28 = vand.u32 4294901760, %v599_v27  ;;  %v1572_v20 = vsel %vm37_vm0, %v1564_v18, 0 }
   0xf   :  { %3238 = vmatpush3.msra.mxu0 %v148_v10  ;;  %3235 = vmatmul.mubr.f32.vlgmr.msra.gmra.mxu1 %v108_v7  ;;  %v3646_v27 = vand.u32 4294901760, %v1572_v20 }
  0x10   :  { %3239 = vmatprep.subr.mxu0 %v3465_v0  ;;  %3244 = vmatprep.subr.mxu1 %v3465_v0 }
  0x11   :  { %3240 = vmatpush3.msra.mxu0 %v155_v11  ;;  %3241 = vmatprep.mubr.msk.f32.mxu0 %vm3466_vm1, %v3465_v0 }
  0x12   :  { %3245 = vmatpush3.msra.mxu1 %v70_v4  ;;  %3242 = vmatmul.mubr.f32.vlgmr.msra.gmra.mxu0 %v109_v12  ;;  %v1565_v12 = vld [vmem:[%s3811_s2] sm:$0xf] }
  0x13   :  { %3246 = vmatprep.subr.mxu1 %v3465_v0  ;;  %3251 = vmatprep.subr.mxu0 %v3465_v0 }
  0x14   :  { %3247 = vmatpush3.msra.mxu1 %v73_v5  ;;  %3248 = vmatprep.mubr.msk.f32.mxu1 %vm3466_vm1, %v3465_v0 }
  0x15   :  { %3252 = vmatpush3.msra.mxu0 %v149_v13  ;;  %3249 = vmatmul.mubr.f32.vlgmr.msra.gmra.mxu1 %v110_v15  ;;  %v1034_v13 = vld [vmem:[%s3813_s5 + $0x8] sm:$0xff] }
  0x16   :  { %3253 = vmatprep.subr.mxu0 %v3465_v0  ;;  %3258 = vmatprep.subr.mxu1 %v3465_v0 }
  0x17   :  { %3254 = vmatpush3.msra.mxu0 %v156_v14  ;;  %3255 = vmatprep.mubr.msk.f32.mxu0 %vm3466_vm1, %v3465_v0  ;;  %v1053_v14 = vsel %vm519_vm2, %v1034_v13, 0 }
  0x18   :  { %3259 = vmatpush3.msra.mxu1 %v70_v4  ;;  %3256 = vmatmul.mubr.f32.vlgmr.msra.gmra.mxu0 %v108_v7  ;;  %v3628_v15 = vand.u32 4294901760, %v1053_v14 }
  0x19   :  { %3260 = vmatprep.subr.mxu1 %v3465_v0  ;;  %3262 = vmatprep.mubr.msk.f32.mxu1 %vm3466_vm1, %v3465_v0 }
  0x1a   :  { %3261 = vmatpush3.msra.mxu1 %v73_v5  ;;  %3267 = vmatprep.mubr.f32.mxu0 %v3566_v28  ;;  %v3600_v5 = vand.u32 4294901760, %v3592_v63  ;;  %v3631_v16 = vsub.f32 %v1053_v14, %v3628_v15 }
  0x1b   :  { %3263 = vmatmul.mubr.f32.vlgmr.msra.gmra.mxu1 %v108_v7  ;;  %v1035_v7 = vld [vmem:[%s3815_s6] sm:$0xff]  ;;  %1568 = vperm.xlu1 %3432, %v1565_v12  }
  0x1c   :  { %3272 = vmatprep.mubr.f32.mxu1 %v3555_v24  ;;  %v1126_v9 = vsub.f32 %v3592_v63, %v3600_v5  ;;  %v3634_v17 = vand.u32 4294901760, %v3631_v16 }
  0x1e   :  { %v3611_v11 = vand.u32 4294901760, %v1126_v9  ;;  %v1136_v19 = vsub.f32 %v3631_v16, %v3634_v17 }
  0x7f   :  { %v35_v29 = vpop.permute.xlu0 %34 }
  0xce   :  { %v114_v30 = vpop.f32.mrf.mxu0 }
  0xcf   :  { %v115_v31 = vadd.f32 %v114_v30, %v35_v29  ;;  %v195_v33 = vpop.f32.mrf.mxu1  ;;  %v3648_v30 = vand.u32 4294901760, %v1136_v19 }
  0xd0   :  { %v3229_v32 = vpop.f32.mrf.mxu0 }
  0xd1   :  { %v196_v34 = vadd.f32 %v195_v33, %v115_v31  ;;  %v3236_v35 = vpop.f32.mrf.mxu1  ;;  %v3105_v31 = vld [vmem:[%s3809_s0 + $0x10] sm:$0xff]  ;;  %v3653_v32 = vand.u32 4294901760, %v3106_v22 }
  0xd2   :  { %v271_v36 = vpop.f32.mrf.mxu0  ;;  %v3658_v35 = vsub.f32 %v1572_v20, %v3646_v27 }
  0xd3   :  { %v272_v38 = vadd.f32 %v271_v36, %v196_v34  ;;  %v3655_v34 = vand.u32 4294901760, %v3105_v31  ;;  %v1681_v37 = vsub.f32 %v3106_v22, %v3653_v32 }
  0xd4   :  { %v3243_v39 = vpop.f32.mrf.mxu0 }
  0xd5   :  { %v346_v40 = vpop.f32.mrf.mxu1  ;;  %v1688_v39 = vsub.f32 %v3105_v31, %v3655_v34 }
  0xd6   :  { %v347_v42 = vadd.f32 %v346_v40, %v272_v38  ;;  %v1643_v40 = vand.u32 4294901760, %v3658_v35 }
  0xd7   :  { %v3250_v43 = vpop.f32.mrf.mxu1 }
  0xd8   :  { %v423_v44 = vpop.f32.mrf.mxu0  ;;  %v1644_v43 = vsub.f32 %v3658_v35, %v1643_v40 }
  0xd9   :  { %v424_v46 = vadd.f32 %v423_v44, %v347_v42  ;;  %v1682_v42 = vand.u32 4294901760, %v1681_v37  ;;  %v1689_v44 = vand.u32 4294901760, %v1688_v39 }
  0xda   :  { %v3257_v47 = vpop.f32.mrf.mxu0 }
  0xdb   :  { %v496_v48 = vpop.f32.mrf.mxu1  ;;  %v1645_v47 = vand.u32 4294901760, %v1644_v43 }
  0xdc   :  { %v497_v49 = vadd.f32 %v496_v48, %v424_v46  ;;  %v1683_v46 = vsub.f32 %v1681_v37, %v1682_v42  ;;  %v1690_v48 = vsub.f32 %v1688_v39, %v1689_v44 }
  0xdd   :  { %v3264_v50 = vpop.f32.mrf.mxu1 }
  0xde   :  { %v500_v52 = vadd.f32 3.0, %v497_v49  ;;  %v1691_v50 = vand.u32 4294901760, %v1690_v48 }
  0xe0   :  { %v501_v54 = vmax.f32 %v500_v52, 0.0 }
  0xe2   :  { %v502_v57 = vmin.f32 %v501_v54, 6.0 }
  0xe4   :  { %v503_v58 = vmul.f32 %v502_v57, %v497_v49  ;;  %v1684_v49 = vand.u32 4294901760, %v1683_v46 }
  0xe6   :  { %v504_v61 = vmul.f32 0.16666667, %v503_v58 }
  0xe8   :  { %v528_v62 = vsel %vm526_vm3, %v504_v61, 0  ;;  %1047 = vrot.lane.b32.xlu0 %v504_v61, %s3468_s18 }
  0xe9   :  { %v561_v1 = vand.u32 4294901760, %v528_v62 }
  0xeb   :  { %v648_v4 = vsub.f32 %v528_v62, %v561_v1  ;;  %3265 = vmatprep.subr.mxu0 %v561_v1 }
  0xec   :  { %511 = vperm.xlu0 %3431, %v507_v2   ;;  %3266 = vmatpush3.msra.mxu0 %v561_v1 }
  0xed   :  { %3268 = vmatmul.mubr.f32.vlgmr.msra.gmra.mxu0 %v3597_v3  ;;  %3275 = vmatprep.subr.mxu0 %v648_v4  ;;  %v649_v6 = vand.u32 4294901760, %v648_v4 }
  0xee   :  { %3276 = vmatpush3.msra.mxu0 %v648_v4  ;;  %3277 = vmatprep.mubr.f32.mxu0 %v3558_v25 }
  0xef   :  { %3285 = vmatprep.subr.mxu0 %v649_v6  ;;  %v650_v8 = vsub.f32 %v648_v4, %v649_v6 }
  0xf0   :  { %1039 = vperm.xlu0 %3431, %v1035_v7  }
  0xf1   :  { %3278 = vmatmul.mubr.f32.vlgmr.msra.gmra.mxu0 %v3576_v51  ;;  %v651_v10 = vand.u32 4294901760, %v650_v8 }
  0xf2   :  { %3286 = vmatpush3.msra.mxu0 %v649_v6  ;;  %3287 = vmatprep.mubr.f32.mxu0 %v3555_v24 }
  0xf3   :  { %3270 = vmatprep.subr.mxu1 %v651_v10 }
  0xf4   :  { %2044 = vperm.xlu0 %3431, %v507_v2   ;;  %3271 = vmatpush3.msra.mxu1 %v651_v10 }
  0xf5   :  { %3273 = vmatmul.mubr.f32.vlgmr.msra.gmra.mxu1 %v3573_v45  ;;  %3280 = vmatprep.subr.mxu1 %v561_v1 }
  0xf6   :  { %3281 = vmatpush3.msra.mxu1 %v561_v1  ;;  %3282 = vmatprep.mubr.f32.mxu1 %v3562_v26 }
  0xf7   :  { %3290 = vmatprep.subr.mxu1 %v561_v1  ;;  %3288 = vmatmul.mubr.f32.vlgmr.msra.gmra.mxu0 %v3573_v45 }
  0xf8   :  { %2571 = vperm.xlu0 %3431, %v1035_v7   ;;  %3297 = vmatprep.mubr.f32.mxu0 %v3611_v11 }
  0xf9   :  { %3283 = vmatmul.mubr.f32.vlgmr.msra.gmra.mxu1 %v3582_v55 }
  0xfa   :  { %3291 = vmatpush3.msra.mxu1 %v561_v1  ;;  %3292 = vmatprep.mubr.f32.mxu1 %v3555_v24 }
  0xfd   :  { %3293 = vmatmul.mubr.f32.vlgmr.msra.gmra.mxu1 %v3573_v45 }
  0xfe   :  { %3302 = vmatprep.mubr.f32.mxu1 %v3585_v59 }
 0x15a   :  { %v1048_v21 = vpop.permute.xlu0 %1047 }
 0x15b   :  { %v1055_v23 = vsel %vm526_vm3, %v1048_v21, 0 }
 0x15c   :  { %v1088_v29 = vand.u32 4294901760, %v1055_v23 }
 0x15e   :  { %v1175_v33 = vsub.f32 %v1055_v23, %v1088_v29  ;;  %3295 = vmatprep.subr.mxu0 %v1088_v29 }
 0x15f   :  { %3296 = vmatpush3.msra.mxu0 %v1088_v29 }
 0x160   :  { %3298 = vmatmul.mubr.f32.vlgmr.msra.gmra.mxu0 %v3648_v30  ;;  %3305 = vmatprep.subr.mxu0 %v1175_v33  ;;  %v1176_v36 = vand.u32 4294901760, %v1175_v33 }
 0x161   :  { %3306 = vmatpush3.msra.mxu0 %v1175_v33  ;;  %3307 = vmatprep.mubr.f32.mxu0 %v3592_v63 }
 0x162   :  { %3315 = vmatprep.subr.mxu0 %v1176_v36  ;;  %v1177_v38 = vsub.f32 %v1175_v33, %v1176_v36 }
 0x164   :  { %3308 = vmatmul.mubr.f32.vlgmr.msra.gmra.mxu0 %v3631_v16  ;;  %v1178_v41 = vand.u32 4294901760, %v1177_v38  ;;  %v1569_v38 = vpop.permute.xlu1 %1568 }
 0x165   :  { %3316 = vmatpush3.msra.mxu0 %v1176_v36  ;;  %3317 = vmatprep.mubr.f32.mxu0 %v3585_v59 }
 0x166   :  { %3300 = vmatprep.subr.mxu1 %v1178_v41  ;;  %3325 = vmatprep.subr.mxu0 %v3465_v0 }
 0x167   :  { %3301 = vmatpush3.msra.mxu1 %v1178_v41  ;;  %v512_v57 = vpop.permute.xlu0 %511 }
 0x168   :  { %3303 = vmatmul.mubr.f32.vlgmr.msra.gmra.mxu1 %v3628_v15  ;;  %3310 = vmatprep.subr.mxu1 %v1088_v29 }
 0x169   :  { %3311 = vmatpush3.msra.mxu1 %v1088_v29  ;;  %3312 = vmatprep.mubr.f32.mxu1 %v3600_v5 }
 0x16a   :  { %3320 = vmatprep.subr.mxu1 %v1088_v29  ;;  %3318 = vmatmul.mubr.f32.vlgmr.msra.gmra.mxu0 %v3628_v15 }
 0x16b   :  { %3326 = vmatpush3.msra.mxu0 %v3653_v32  ;;  %3329 = vmatprep.mubr.msk.f32.mxu0 %vm3466_vm1, %v3465_v0  ;;  %v1040_v23 = vpop.permute.xlu0 %1039 }
 0x16c   :  { %3313 = vmatmul.mubr.f32.vlgmr.msra.gmra.mxu1 %v3634_v17  ;;  %3327 = vmatprep.subr.mxu0 %v3465_v0 }
 0x16d   :  { %3321 = vmatpush3.msra.mxu1 %v1088_v29  ;;  %3322 = vmatprep.mubr.f32.mxu1 %v3585_v59 }
 0x16e   :  { %3328 = vmatpush3.msra.mxu0 %v3655_v34  ;;  %3332 = vmatprep.subr.mxu1 %v3465_v0 }
 0x16f   :  { %3330 = vmatmul.mubr.f32.vlgmr.msra.gmra.mxu0 %v1645_v47  ;;  %3339 = vmatprep.subr.mxu0 %v3465_v0 }
 0x170   :  { %3323 = vmatmul.mubr.f32.vlgmr.msra.gmra.mxu1 %v3628_v15  ;;  %3340 = vmatpush3.msra.mxu0 %v1681_v37 }
 0x171   :  { %3333 = vmatpush3.msra.mxu1 %v1684_v49  ;;  %3341 = vmatprep.subr.mxu0 %v3465_v0 }
 0x172   :  { %3334 = vmatprep.subr.mxu1 %v3465_v0  ;;  %3336 = vmatprep.mubr.msk.f32.mxu1 %vm3466_vm1, %v3465_v0 }
 0x173   :  { %3335 = vmatpush3.msra.mxu1 %v1691_v50  ;;  %3342 = vmatpush3.msra.mxu0 %v1688_v39 }
 0x174   :  { %3343 = vmatprep.mubr.msk.f32.mxu0 %vm3466_vm1, %v3465_v0  ;;  %3337 = vmatmul.mubr.f32.vlgmr.msra.gmra.mxu1 %v3646_v27 }
 0x175   :  { %3344 = vmatmul.mubr.f32.vlgmr.msra.gmra.mxu0 %v3658_v35  ;;  %3346 = vmatprep.subr.mxu1 %v3465_v0 }
 0x176   :  { %3353 = vmatprep.subr.mxu0 %v3465_v0  ;;  %3347 = vmatpush3.msra.mxu1 %v3653_v32 }
 0x177   :  { %3354 = vmatpush3.msra.mxu0 %v1682_v42  ;;  %3348 = vmatprep.subr.mxu1 %v3465_v0 }
 0x178   :  { %3355 = vmatprep.subr.mxu0 %v3465_v0  ;;  %3349 = vmatpush3.msra.mxu1 %v3655_v34 }
 0x179   :  { %3350 = vmatprep.mubr.msk.f32.mxu1 %vm3466_vm1, %v3465_v0  ;;  %3356 = vmatpush3.msra.mxu0 %v1689_v44 }
 0x17a   :  { %3357 = vmatprep.mubr.msk.f32.mxu0 %vm3466_vm1, %v3465_v0  ;;  %3351 = vmatmul.mubr.f32.vlgmr.msra.gmra.mxu1 %v1643_v40 }
 0x17b   :  { %3358 = vmatmul.mubr.f32.vlgmr.msra.gmra.mxu0 %v3646_v27  ;;  %3360 = vmatprep.subr.mxu1 %v3465_v0 }
 0x17c   :  { %3361 = vmatpush3.msra.mxu1 %v3653_v32  ;;  %3364 = vmatprep.mubr.msk.f32.mxu1 %vm3466_vm1, %v3465_v0 }
 0x17d   :  { %3362 = vmatprep.subr.mxu1 %v3465_v0  ;;  %3369 = vmatprep.mubr.f32.mxu0 %v3566_v28 }
 0x17e   :  { %3363 = vmatpush3.msra.mxu1 %v3655_v34 }
 0x17f   :  { %3365 = vmatmul.mubr.f32.vlgmr.msra.gmra.mxu1 %v3646_v27 }
 0x180   :  { %3374 = vmatprep.mubr.f32.mxu1 %v3555_v24 }
 0x1ad   :  { %v3710_v52 = vpop.f32.mrf.mxu0 }
 0x1af   :  { %v602_v53 = vpop.f32.mrf.mxu0 }
 0x1b0   :  { %v603_v60 = vadd.f32 %v602_v53, %v512_v57 }
 0x1b1   :  { %v3712_v54 = vpop.f32.mrf.mxu0 }
 0x1b3   :  { %v768_v56 = vpop.f32.mrf.mxu0 }
 0x1b5   :  { %v3714_v58 = vpop.f32.mrf.mxu1 }
 0x1b7   :  { %v688_v61 = vpop.f32.mrf.mxu1  ;;  %v3716_v0 = vpop.f32.mrf.mxu0 }
 0x1b8   :  { %v689_v28 = vadd.f32 %v688_v61, %v603_v60 }
 0x1b9   :  { %v3718_v62 = vpop.f32.mrf.mxu1  ;;  %v931_v4 = vpop.f32.mrf.mxu0 }
 0x1ba   :  { %v769_v1 = vadd.f32 %v768_v56, %v689_v28 }
 0x1bb   :  { %v849_v2 = vpop.f32.mrf.mxu1 }
 0x1bc   :  { %v850_v6 = vadd.f32 %v849_v2, %v769_v1 }
 0x1bd   :  { %v3720_v7 = vpop.f32.mrf.mxu1 }
 0x1be   :  { %v932_v8 = vadd.f32 %v931_v4, %v850_v6 }
 0x1bf   :  { %v1009_v9 = vpop.f32.mrf.mxu1 }
 0x1c0   :  { %v1010_v10 = vadd.f32 %v1009_v9, %v932_v8 }
 0x1c2   :  { %v3101_v12 = vmul.f32 -1.442695, %v1010_v10 }
 0x1c4   :  { %3433 = vpow2.f32 %v3101_v12 }
 0x1d1   :  { %v3434_v13 = vpop.eup %3433 }
 0x1d2   :  { %v1025_v14 = vadd.f32 1.0, %v3434_v13 }
 0x1d4   :  { %3435 = vrcp.f32 %v1025_v14 }
 0x1e1   :  { %v3436_v18 = vpop.eup %3435 }
 0x1e2   :  { %1031 = vst.msk [vmem:[%s3816_s7] sm:$0xff] %vm37_vm0, %v3436_v18 }
 0x220   :  { %v3726_v19 = vpop.f32.mrf.mxu0 }
 0x222   :  { %v1129_v20 = vpop.f32.mrf.mxu0 }
 0x223   :  { %v1130_v29 = vadd.f32 %v1129_v20, %v1040_v23 }
 0x224   :  { %v3728_v21 = vpop.f32.mrf.mxu0 }
 0x226   :  { %v1295_v22 = vpop.f32.mrf.mxu0 }
 0x228   :  { %v3730_v27 = vpop.f32.mrf.mxu1 }
 0x22a   :  { %v1215_v31 = vpop.f32.mrf.mxu1  ;;  %v3732_v32 = vpop.f32.mrf.mxu0 }
 0x22b   :  { %v1216_v33 = vadd.f32 %v1215_v31, %v1130_v29 }
 0x22c   :  { %v3734_v34 = vpop.f32.mrf.mxu1  ;;  %v1458_v35 = vpop.f32.mrf.mxu0 }
 0x22d   :  { %v1296_v36 = vadd.f32 %v1295_v22, %v1216_v33  ;;  %v508_v33 = vld [vmem:[%s3814_s4 + $0x8] sm:$0xff] }
 0x22e   :  { %v1376_v37 = vpop.f32.mrf.mxu1 }
 0x22f   :  { %v1377_v39 = vadd.f32 %v1376_v37, %v1296_v36  ;;  %v1647_v40 = vpop.f32.mrf.mxu0  ;;  %v1036_v37 = vld [vmem:[%s3815_s6 + $0x8] sm:$0xff] }
 0x230   :  { %v3736_v41 = vpop.f32.mrf.mxu1  ;;  %v1648_v43 = vadd.f32 %v1647_v40, %v1569_v38 }
 0x231   :  { %v1459_v42 = vadd.f32 %v1458_v35, %v1377_v39  ;;  %v3331_v44 = vpop.f32.mrf.mxu0 }
 0x232   :  { %v1536_v46 = vpop.f32.mrf.mxu1 }
 0x233   :  { %v1537_v47 = vadd.f32 %v1536_v46, %v1459_v42 }
 0x234   :  { %v1728_v48 = vpop.f32.mrf.mxu1 }
 0x235   :  { %v3103_v49 = vmul.f32 -1.442695, %v1537_v47  ;;  %v1729_v50 = vadd.f32 %v1728_v48, %v1648_v43  ;;  %v1804_v53 = vpop.f32.mrf.mxu0 }
 0x236   :  { %v3338_v56 = vpop.f32.mrf.mxu1 }
 0x237   :  { %3437 = vpow2.f32 %v3103_v49  ;;  %v1805_v57 = vadd.f32 %v1804_v53, %v1729_v50  ;;  %v3345_v60 = vpop.f32.mrf.mxu0  ;;  %v2045_v53 = vpop.permute.xlu0 %2044 }
 0x23a   :  { %v1879_v61 = vpop.f32.mrf.mxu1 }
 0x23b   :  { %v1880_v28 = vadd.f32 %v1879_v61, %v1805_v57  ;;  %v1956_v1 = vpop.f32.mrf.mxu0 }
 0x23c   :  { %v3352_v2 = vpop.f32.mrf.mxu1 }
 0x23d   :  { %v1957_v4 = vadd.f32 %v1956_v1, %v1880_v28  ;;  %v3359_v6 = vpop.f32.mrf.mxu0 }
 0x23f   :  { %v2029_v8 = vpop.f32.mrf.mxu1 }
 0x240   :  { %v2030_v9 = vadd.f32 %v2029_v8, %v1957_v4 }
 0x241   :  { %v3366_v10 = vpop.f32.mrf.mxu1 }
 0x242   :  { %v2033_v12 = vadd.f32 3.0, %v2030_v9 }
 0x244   :  { %v3438_v13 = vpop.eup %3437  ;;  %v2034_v14 = vmax.f32 %v2033_v12, 0.0 }
 0x245   :  { %v1552_v18 = vadd.f32 1.0, %v3438_v13 }
 0x246   :  { %v2035_v20 = vmin.f32 %v2034_v14, 6.0 }
 0x247   :  { %3439 = vrcp.f32 %v1552_v18 }
 0x248   :  { %v2036_v22 = vmul.f32 %v2035_v20, %v2030_v9 }
 0x24a   :  { %v2037_v23 = vmul.f32 0.16666667, %v2036_v22 }
 0x24c   :  { %v2059_v29 = vsel %vm526_vm3, %v2037_v23, 0  ;;  %2579 = vrot.lane.b32.xlu1 %v2037_v23, %s3468_s18 }
 0x24d   :  { %v2092_v31 = vand.u32 4294901760, %v2059_v29 }
 0x24f   :  { %v2179_v35 = vsub.f32 %v2059_v29, %v2092_v31  ;;  %3367 = vmatprep.subr.mxu0 %v2092_v31 }
 0x250   :  { %516 = vperm.xlu1 %3432, %v508_v33   ;;  %3368 = vmatpush3.msra.mxu0 %v2092_v31 }
 0x251   :  { %3370 = vmatmul.mubr.f32.vlgmr.msra.gmra.mxu0 %v3597_v3  ;;  %3377 = vmatprep.subr.mxu0 %v2179_v35  ;;  %v2180_v36 = vand.u32 4294901760, %v2179_v35 }
 0x252   :  { %3378 = vmatpush3.msra.mxu0 %v2179_v35  ;;  %3379 = vmatprep.mubr.f32.mxu0 %v3558_v25 }
 0x253   :  { %3387 = vmatprep.subr.mxu0 %v2180_v36  ;;  %v2181_v38 = vsub.f32 %v2179_v35, %v2180_v36 }
 0x254   :  { %v3440_v39 = vpop.eup %3439  ;;  %1044 = vperm.xlu1 %3432, %v1036_v37  }
 0x255   :  { %1559 = vst.msk [vmem:[%s3817_s8] sm:$0xff] %vm1558_vm4, %v3440_v39  ;;  %3380 = vmatmul.mubr.f32.vlgmr.msra.gmra.mxu0 %v3576_v51  ;;  %v2182_v3 = vand.u32 4294901760, %v2181_v38 }
 0x256   :  { %3388 = vmatpush3.msra.mxu0 %v2180_v36  ;;  %3389 = vmatprep.mubr.f32.mxu0 %v3555_v24 }
 0x257   :  { %3372 = vmatprep.subr.mxu1 %v2182_v3 }
 0x258   :  { %2049 = vperm.xlu1 %3432, %v508_v33   ;;  %3373 = vmatpush3.msra.mxu1 %v2182_v3 }
 0x259   :  { %3375 = vmatmul.mubr.f32.vlgmr.msra.gmra.mxu1 %v3573_v45  ;;  %3382 = vmatprep.subr.mxu1 %v2092_v31 }
 0x25a   :  { %3383 = vmatpush3.msra.mxu1 %v2092_v31  ;;  %3384 = vmatprep.mubr.f32.mxu1 %v3562_v26 }
 0x25b   :  { %3392 = vmatprep.subr.mxu1 %v2092_v31  ;;  %3390 = vmatmul.mubr.f32.vlgmr.msra.gmra.mxu0 %v3573_v45 }
 0x25c   :  { %2576 = vperm.xlu1 %3432, %v1036_v37   ;;  %3399 = vmatprep.mubr.f32.mxu0 %v3611_v11 }
 0x25d   :  { %3385 = vmatmul.mubr.f32.vlgmr.msra.gmra.mxu1 %v3582_v55 }
 0x25e   :  { %3393 = vmatpush3.msra.mxu1 %v2092_v31  ;;  %3394 = vmatprep.mubr.f32.mxu1 %v3555_v24 }
 0x261   :  { %3395 = vmatmul.mubr.f32.vlgmr.msra.gmra.mxu1 %v3573_v45 }
 0x262   :  { %3404 = vmatprep.mubr.f32.mxu1 %v3585_v59 }
 0x2be   :  { %v2580_v25 = vpop.permute.xlu1 %2579 }
 0x2bf   :  { %v2587_v51 = vsel %vm526_vm3, %v2580_v25, 0 }
 0x2c0   :  { %v2620_v40 = vand.u32 4294901760, %v2587_v51 }
 0x2c2   :  { %v2707_v26 = vsub.f32 %v2587_v51, %v2620_v40  ;;  %3397 = vmatprep.subr.mxu0 %v2620_v40 }
 0x2c3   :  { %3398 = vmatpush3.msra.mxu0 %v2620_v40 }
 0x2c4   :  { %3400 = vmatmul.mubr.f32.vlgmr.msra.gmra.mxu0 %v3648_v30  ;;  %3407 = vmatprep.subr.mxu0 %v2707_v26  ;;  %v2708_v11 = vand.u32 4294901760, %v2707_v26 }
 0x2c5   :  { %3408 = vmatpush3.msra.mxu0 %v2707_v26  ;;  %3409 = vmatprep.mubr.f32.mxu0 %v3592_v63 }
 0x2c6   :  { %3417 = vmatprep.subr.mxu0 %v2708_v11  ;;  %v2709_v24 = vsub.f32 %v2707_v26, %v2708_v11  ;;  %v2572_v26 = vpop.permute.xlu0 %2571 }
 0x2c8   :  { %3410 = vmatmul.mubr.f32.vlgmr.msra.gmra.mxu0 %v3631_v16  ;;  %v2710_v45 = vand.u32 4294901760, %v2709_v24 }
 0x2c9   :  { %3418 = vmatpush3.msra.mxu0 %v2708_v11  ;;  %3419 = vmatprep.mubr.f32.mxu0 %v3585_v59 }
 0x2ca   :  { %3402 = vmatprep.subr.mxu1 %v2710_v45 }
 0x2cb   :  { %v517_v55 = vpop.permute.xlu1 %516  ;;  %3403 = vmatpush3.msra.mxu1 %v2710_v45 }
 0x2cc   :  { %v613_v42 = vadd.f32 %v3710_v52, %v517_v55  ;;  %3405 = vmatmul.mubr.f32.vlgmr.msra.gmra.mxu1 %v3628_v15  ;;  %3412 = vmatprep.subr.mxu1 %v2620_v40 }
 0x2cd   :  { %3413 = vmatpush3.msra.mxu1 %v2620_v40  ;;  %3414 = vmatprep.mubr.f32.mxu1 %v3600_v5 }
 0x2ce   :  { %v695_v63 = vadd.f32 %v3714_v58, %v613_v42  ;;  %3422 = vmatprep.subr.mxu1 %v2620_v40  ;;  %3420 = vmatmul.mubr.f32.vlgmr.msra.gmra.mxu0 %v3628_v15 }
 0x2cf   :  { %v1045_v16 = vpop.permute.xlu1 %1044 }
 0x2d0   :  { %v776_v30 = vadd.f32 %v3712_v54, %v695_v63  ;;  %v1140_v43 = vadd.f32 %v3726_v19, %v1045_v16  ;;  %3415 = vmatmul.mubr.f32.vlgmr.msra.gmra.mxu1 %v3634_v17 }
 0x2d1   :  { %3423 = vmatpush3.msra.mxu1 %v2620_v40  ;;  %3424 = vmatprep.mubr.f32.mxu1 %v3585_v59 }
 0x2d2   :  { %v858_v52 = vadd.f32 %v3718_v62, %v776_v30  ;;  %v1222_v44 = vadd.f32 %v3730_v27, %v1140_v43 }
 0x2d4   :  { %v938_v5 = vadd.f32 %v3716_v0, %v858_v52  ;;  %v1303_v58 = vadd.f32 %v3728_v21, %v1222_v44  ;;  %3425 = vmatmul.mubr.f32.vlgmr.msra.gmra.mxu1 %v3628_v15 }
 0x2d6   :  { %v1016_v46 = vadd.f32 %v3720_v7, %v938_v5  ;;  %v1385_v54 = vadd.f32 %v3734_v34, %v1303_v58 }
 0x2d8   :  { %v3102_v19 = vmul.f32 -1.442695, %v1016_v46  ;;  %v1465_v17 = vadd.f32 %v3732_v32, %v1385_v54 }
 0x2da   :  { %3441 = vpow2.f32 %v3102_v19  ;;  %v1543_v59 = vadd.f32 %v3736_v41, %v1465_v17  ;;  %v2050_v41 = vpop.permute.xlu1 %2049 }
 0x2dc   :  { %v3104_v47 = vmul.f32 -1.442695, %v1543_v59 }
 0x2de   :  { %3443 = vpow2.f32 %v3104_v47  ;;  %v2577_v40 = vpop.permute.xlu1 %2576 }
 0x2e7   :  { %v3442_v62 = vpop.eup %3441 }
 0x2e8   :  { %v1026_v27 = vadd.f32 1.0, %v3442_v62 }
 0x2ea   :  { %3445 = vrcp.f32 %v1026_v27 }
 0x2eb   :  { %v3444_v0 = vpop.eup %3443 }
 0x2ec   :  { %v1553_v48 = vadd.f32 1.0, %v3444_v0 }
 0x2ee   :  { %3447 = vrcp.f32 %v1553_v48 }
 0x2f7   :  { %v3446_v21 = vpop.eup %3445 }
 0x2f8   :  { %1032 = vst.msk [vmem:[%s3816_s7 + $0x8] sm:$0xff] %vm37_vm0, %v3446_v21 }
 0x2fb   :  { %v3448_v15 = vpop.eup %3447 }
 0x2fc   :  { %1560 = vst.msk [vmem:[%s3817_s8 + $0x8] sm:$0xff] %vm1558_vm4, %v3448_v15 }
 0x311   :  { %v3371_v7 = vpop.f32.mrf.mxu0 }
 0x312   :  { %v2144_v50 = vadd.f32 %v3371_v7, %v2050_v41 }
 0x313   :  { %v2133_v32 = vpop.f32.mrf.mxu0 }
 0x314   :  { %v2134_v57 = vadd.f32 %v2133_v32, %v2045_v53 }
 0x315   :  { %v3381_v34 = vpop.f32.mrf.mxu0 }
 0x317   :  { %v2299_v49 = vpop.f32.mrf.mxu0 }
 0x319   :  { %v3376_v56 = vpop.f32.mrf.mxu1 }
 0x31a   :  { %v2226_v60 = vadd.f32 %v3376_v56, %v2144_v50 }
 0x31b   :  { %v2219_v61 = vpop.f32.mrf.mxu1  ;;  %v3391_v28 = vpop.f32.mrf.mxu0 }
 0x31c   :  { %v2220_v1 = vadd.f32 %v2219_v61, %v2134_v57  ;;  %v2307_v2 = vadd.f32 %v3381_v34, %v2226_v60 }
 0x31d   :  { %v3386_v4 = vpop.f32.mrf.mxu1  ;;  %v2462_v10 = vpop.f32.mrf.mxu0 }
 0x31e   :  { %v2300_v6 = vadd.f32 %v2299_v49, %v2220_v1  ;;  %v2389_v8 = vadd.f32 %v3386_v4, %v2307_v2 }
 0x31f   :  { %v2380_v9 = vpop.f32.mrf.mxu1 }
 0x320   :  { %v2381_v12 = vadd.f32 %v2380_v9, %v2300_v6  ;;  %v2469_v13 = vadd.f32 %v3391_v28, %v2389_v8 }
 0x321   :  { %v3396_v14 = vpop.f32.mrf.mxu1 }
 0x322   :  { %v2463_v18 = vadd.f32 %v2462_v10, %v2381_v12  ;;  %v2547_v20 = vadd.f32 %v3396_v14, %v2469_v13 }
 0x323   :  { %v2540_v22 = vpop.f32.mrf.mxu1 }
 0x324   :  { %v3108_v23 = vmul.f32 -1.442695, %v2547_v20  ;;  %v2541_v29 = vadd.f32 %v2540_v22, %v2463_v18 }
 0x326   :  { %3449 = vpow2.f32 %v3108_v23  ;;  %v3107_v31 = vmul.f32 -1.442695, %v2541_v29 }
 0x328   :  { %3451 = vpow2.f32 %v3107_v31 }
 0x333   :  { %v3450_v33 = vpop.eup %3449 }
 0x334   :  { %v2557_v35 = vadd.f32 1.0, %v3450_v33 }
 0x335   :  { %v3452_v36 = vpop.eup %3451 }
 0x336   :  { %3453 = vrcp.f32 %v2557_v35  ;;  %v2556_v37 = vadd.f32 1.0, %v3452_v36 }
 0x338   :  { %3455 = vrcp.f32 %v2556_v37 }
 0x343   :  { %v3454_v38 = vpop.eup %3453 }
 0x344   :  { %3110 = vst.msk [vmem:[%s3816_s7 + $0x18] sm:$0xff] %vm37_vm0, %v3454_v38 }
 0x345   :  { %v3456_v39 = vpop.eup %3455 }
 0x346   :  { %3109 = vst.msk [vmem:[%s3816_s7 + $0x10] sm:$0xff] %vm37_vm0, %v3456_v39 }
 0x384   :  { %v3401_v3 = vpop.f32.mrf.mxu0 }
 0x385   :  { %v2672_v11 = vadd.f32 %v3401_v3, %v2577_v40 }
 0x386   :  { %v2661_v25 = vpop.f32.mrf.mxu0 }
 0x387   :  { %v2662_v55 = vadd.f32 %v2661_v25, %v2572_v26 }
 0x388   :  { %v3411_v51 = vpop.f32.mrf.mxu0 }
 0x38a   :  { %v2827_v45 = vpop.f32.mrf.mxu0 }
 0x38c   :  { %v3406_v24 = vpop.f32.mrf.mxu1 }
 0x38d   :  { %v2754_v42 = vadd.f32 %v3406_v24, %v2672_v11 }
 0x38e   :  { %v2747_v63 = vpop.f32.mrf.mxu1  ;;  %v3421_v52 = vpop.f32.mrf.mxu0 }
 0x38f   :  { %v2748_v16 = vadd.f32 %v2747_v63, %v2662_v55  ;;  %v2835_v30 = vadd.f32 %v3411_v51, %v2754_v42 }
 0x390   :  { %v3416_v43 = vpop.f32.mrf.mxu1  ;;  %v2990_v19 = vpop.f32.mrf.mxu0 }
 0x391   :  { %v2828_v44 = vadd.f32 %v2827_v45, %v2748_v16  ;;  %v2917_v5 = vadd.f32 %v3416_v43, %v2835_v30 }
 0x392   :  { %v2908_v58 = vpop.f32.mrf.mxu1 }
 0x393   :  { %v2909_v46 = vadd.f32 %v2908_v58, %v2828_v44  ;;  %v2997_v54 = vadd.f32 %v3421_v52, %v2917_v5 }
 0x394   :  { %v3426_v17 = vpop.f32.mrf.mxu1 }
 0x395   :  { %v2991_v59 = vadd.f32 %v2990_v19, %v2909_v46  ;;  %v3075_v47 = vadd.f32 %v3426_v17, %v2997_v54 }
 0x396   :  { %v3068_v62 = vpop.f32.mrf.mxu1 }
 0x397   :  { %v3112_v27 = vmul.f32 -1.442695, %v3075_v47  ;;  %v3069_v0 = vadd.f32 %v3068_v62, %v2991_v59 }
 0x399   :  { %3457 = vpow2.f32 %v3112_v27  ;;  %v3111_v48 = vmul.f32 -1.442695, %v3069_v0 }
 0x39b   :  { %3459 = vpow2.f32 %v3111_v48 }
 0x3a6   :  { %v3458_v21 = vpop.eup %3457 }
 0x3a7   :  { %v3085_v15 = vadd.f32 1.0, %v3458_v21 }
 0x3a8   :  { %v3460_v7 = vpop.eup %3459 }
 0x3a9   :  { %3461 = vrcp.f32 %v3085_v15  ;;  %v3084_v32 = vadd.f32 1.0, %v3460_v7 }
 0x3ab   :  { %3463 = vrcp.f32 %v3084_v32 }
 0x3b6   :  { %v3462_v34 = vpop.eup %3461 }
 0x3b7   :  { %3114 = vst.msk [vmem:[%s3817_s8 + $0x18] sm:$0xff] %vm1558_vm4, %v3462_v34 }
 0x3b8   :  { %v3464_v41 = vpop.eup %3463 }
 0x3b9   :  { %3113 = vst.msk [vmem:[%s3817_s8 + $0x10] sm:$0xff] %vm1558_vm4, %v3464_v41 }

</bundles_post_ra>
